<compile_context>
chip_gen: v6e
topology: v6e:2x2x1
jax: 0.10.0
libtpu: 0.0.40
codegen_flags: <defaults>
</compile_context>

<pallas_src>
import functools

import jax
import jax.numpy as jnp
from jax.experimental import pallas as pl
from jax.experimental.pallas import tpu as pltpu


# ---------------------------------------------------------------------------
# Kernel
# ---------------------------------------------------------------------------
def _fc_kernel(x_ref, w_ref, bias_ref, o_ref, acc_ref, *, relu, leaky_slope):
    """One (tm, tn) output tile; K is the innermost ("arbitrary") grid axis.

    x_ref:    (tm, tk)  bf16 activations tile
    w_ref:    (tk, tn)  bf16 BN-folded weight tile (W_eff = W.T * bn_scale)
    bias_ref: (1, tn)   f32  effective bias (b*scale - mean*scale + beta)
    o_ref:    (tm, tn)  f32  output tile
    acc_ref:  (tm, tn)  f32  VMEM accumulator scratch
    """
    k = pl.program_id(2)

    @pl.when(k == 0)
    def _():
        acc_ref[...] = jnp.zeros_like(acc_ref)

    acc_ref[...] += jnp.dot(
        x_ref[...], w_ref[...], preferred_element_type=jnp.float32
    )

    @pl.when(k == pl.num_programs(2) - 1)
    def _():
        y = acc_ref[...] + bias_ref[...]          # fused Linear bias + BN affine
        if relu:
            y = jnp.where(y >= 0, y, leaky_slope * y)   # LeakyReLU(0.1)
        # Dropout in eval mode is identity.
        o_ref[...] = y.astype(o_ref.dtype)


# ---------------------------------------------------------------------------
# Wrapper
# ---------------------------------------------------------------------------
def _pick_block(dim, target, align):
    """Largest multiple of `align` that divides `dim` and is <= target, else `dim`."""
    if dim <= target:
        return dim
    t = (target // align) * align
    while t >= align:
        if dim % t == 0:
            return t
        t -= align
    return dim  # fall back: single full-extent block


def prepare_fc_layer_params(w, b, bn_gamma, bn_beta, bn_mean, bn_var,
                            *, eps=1e-5, compute_dtype=jnp.bfloat16):
    """One-time fold of Linear + BatchNorm1d (eval) into (W_eff, bias_eff).

    w: (N, D) PyTorch Linear weight layout. Returns:
      w_eff:    (D, N) compute_dtype   = W.T * (gamma / sqrt(var + eps))
      bias_eff: (1, N) float32         = (b - mean) * scale + beta
    """
    scale = bn_gamma / jnp.sqrt(bn_var + eps)                    # (N,)
    w_eff = (jnp.transpose(w) * scale[None, :]).astype(compute_dtype)
    bias_eff = ((b - bn_mean) * scale + bn_beta).astype(jnp.float32)
    return w_eff, bias_eff.reshape(1, -1)


def fc_layer_forward(x, w_eff, bias_eff, *, relu=False, leaky_slope=0.1,
                     compute_dtype=jnp.bfloat16,
                     tm_target=256, tn_target=256, tk_target=512):
    """Eval-mode FCLayer forward.  x: (B, D) f32, w_eff: (D, N), bias_eff: (1, N)."""
    B, D = x.shape
    D2, N = w_eff.shape
    assert D == D2 and bias_eff.shape == (1, N)

    # Tile sizes: lane-dense outputs (tn multiple of 128 unless N itself is smaller),
    # tm aligned to the 8-row sublane minimum, tk aligned to 128 when tiling K.
    tm = _pick_block(B, tm_target, 8)
    tn = _pick_block(N, tn_target, 128)
    tk = _pick_block(D, tk_target, 128)
    gm, gn, gk = B // tm, N // tn, D // tk

    x_c = x.astype(compute_dtype)
    itemsize = jnp.dtype(compute_dtype).itemsize
    cost = pl.CostEstimate(
        flops=2 * B * D * N,
        transcendentals=0,
        bytes_accessed=B * D * itemsize + D * N * itemsize + N * 4 + B * N * 4,
    )

    kernel = functools.partial(_fc_kernel, relu=relu, leaky_slope=leaky_slope)

    out = pl.pallas_call(
        kernel,
        out_shape=jax.ShapeDtypeStruct((B, N), jnp.float32),
        grid_spec=pltpu.PrefetchScalarGridSpec(
            num_scalar_prefetch=0,
            grid=(gm, gn, gk),
            in_specs=[
                pl.BlockSpec((tm, tk), lambda i, j, k: (i, k)),   # x
                pl.BlockSpec((tk, tn), lambda i, j, k: (k, j)),   # W_eff
                pl.BlockSpec((1, tn), lambda i, j, k: (0, j)),    # bias_eff
            ],
            out_specs=pl.BlockSpec((tm, tn), lambda i, j, k: (i, j)),
            scratch_shapes=[pltpu.VMEM((tm, tn), jnp.float32)],
        ),
        compiler_params=pltpu.CompilerParams(
            dimension_semantics=("parallel", "parallel", "arbitrary")),
        cost_estimate=cost,
    )(x_c, w_eff, bias_eff)
    return out


# ---------------------------------------------------------------------------
# Init (matches weights_init_kaiming)
# ---------------------------------------------------------------------------
def init_fc_layer_params(key, input_dim, linear=512):
    k_w, k_g = jax.random.split(key, 2)
    # Linear: kaiming_normal_(a=0, mode='fan_out') -> std = sqrt(2 / fan_out)
    fan_out = linear
    w = jax.random.normal(k_w, (linear, input_dim), jnp.float32) * jnp.sqrt(2.0 / fan_out)
    b = jnp.zeros((linear,), jnp.float32)
    # BatchNorm1d: weight ~ N(1.0, 0.02), bias = 0, running stats = (0, 1)
    gamma = 1.0 + 0.02 * jax.random.normal(k_g, (linear,), jnp.float32)
    beta = jnp.zeros((linear,), jnp.float32)
    running_mean = jnp.zeros((linear,), jnp.float32)
    running_var = jnp.ones((linear,), jnp.float32)
    return w, b, gamma, beta, running_mean, running_var


# ---------------------------------------------------------------------------
# Demo / correctness check
# ---------------------------------------------------------------------------
if __name__ == "__main__":
    key = jax.random.PRNGKey(0)
    k_x, k_p = jax.random.split(key)

    B, input_dim, linear = 8, 32, 512
    eps = 1e-5
    x = jax.random.normal(k_x, (B, input_dim), jnp.float32)

    w, b, gamma, beta, r_mean, r_var = init_fc_layer_params(k_p, input_dim, linear)
    w_eff, bias_eff = prepare_fc_layer_params(w, b, gamma, beta, r_mean, r_var, eps=eps)

    for relu in (False, True):
        out = fc_layer_forward(x, w_eff, bias_eff, relu=relu)
        out = jax.block_until_ready(out)
        assert out.shape == (B, linear)

        # Reference 1: exact kernel math (same bf16-cast operands, f32 accumulate).
        ref_exact = (x.astype(jnp.bfloat16).astype(jnp.float32)
                     @ w_eff.astype(jnp.float32)) + bias_eff
        if relu:
            ref_exact = jnp.where(ref_exact >= 0, ref_exact, 0.1 * ref_exact)
        assert jnp.allclose(out, ref_exact, atol=1e-4, rtol=1e-4), "kernel-math mismatch"

        # Reference 2: full-f32 module semantics (Linear -> BN(eval) -> [LeakyReLU]).
        ref = x @ w.T + b
        ref = (ref - r_mean) / jnp.sqrt(r_var + eps) * gamma + beta
        if relu:
            ref = jnp.where(ref >= 0, ref, 0.1 * ref)
        assert jnp.allclose(out, ref, atol=2e-2, rtol=2e-2), "module-level mismatch (bf16)"

    print("KERNEL_OK")
</pallas_src>

<mosaic_0001>
module attributes {stable_mosaic.version = 11 : i64} {
  func.func @_fc_kernel(%arg0: i32, %arg1: i32, %arg2: i32, %arg3: memref<8x32xbf16, #tpu.memory_space<vmem>>, %arg4: memref<32x256xbf16, #tpu.memory_space<vmem>>, %arg5: memref<1x256xf32, #tpu.memory_space<vmem>>, %arg6: memref<8x256xf32, #tpu.memory_space<vmem>>, %arg7: memref<8x256xf32, #tpu.memory_space<vmem>>) attributes {dimension_semantics = [#tpu.dimension_semantics<parallel>, #tpu.dimension_semantics<parallel>, #tpu.dimension_semantics<arbitrary>], iteration_bounds = array<i64: 1, 2, 1>, scalar_prefetch = 0 : i64, scratch_operands = 1 : i64, tpu.core_type = #tpu.core_type<tc>, window_params = [{transform_indices = @transform_0, window_bounds = array<i64: 8, 32>}, {transform_indices = @transform_1, window_bounds = array<i64: 32, 256>}, {transform_indices = @transform_2, window_bounds = array<i64: 1, 256>}, {transform_indices = @transform_3, window_bounds = array<i64: 8, 256>}]} {
    %c0_i32 = arith.constant 0 : i32
    %0 = arith.cmpi eq, %arg2, %c0_i32 : i32
    %1 = arith.extui %0 : i1 to i32
    %c0_i32_0 = arith.constant 0 : i32
    %2 = arith.cmpi ne, %1, %c0_i32_0 : i32
    scf.if %2 {
      %cst_10 = arith.constant 0.000000e+00 : f32
      %12 = vector.broadcast %cst_10 : f32 to vector<8x256xf32>
      %c0_11 = arith.constant 0 : index
      %c0_12 = arith.constant 0 : index
      %13 = vector.load %arg7[%c0_11, %c0_12] : memref<8x256xf32, #tpu.memory_space<vmem>>, vector<8x256xf32>
      tpu.vector_store %arg7[%c0_11, %c0_12], %12 {strides = array<i32>} : memref<8x256xf32, #tpu.memory_space<vmem>>, vector<8x256xf32>,
    } else {
    }
    %c0 = arith.constant 0 : index
    %c0_1 = arith.constant 0 : index
    %3 = vector.load %arg7[%c0, %c0_1] : memref<8x256xf32, #tpu.memory_space<vmem>>, vector<8x256xf32>
    %c0_2 = arith.constant 0 : index
    %c0_3 = arith.constant 0 : index
    %4 = vector.load %arg3[%c0_2, %c0_3] : memref<8x32xbf16, #tpu.memory_space<vmem>>, vector<8x32xbf16>
    %c0_4 = arith.constant 0 : index
    %c0_5 = arith.constant 0 : index
    %5 = vector.load %arg4[%c0_4, %c0_5] : memref<32x256xbf16, #tpu.memory_space<vmem>>, vector<32x256xbf16>
    %cst = arith.constant dense<0.000000e+00> : vector<8x256xf32>
    %6 = tpu.matmul %4, %5, %cst {dimension_numbers = #tpu.dot_dimension_numbers<[1], [0], [0], [1], [0, 0, 1, 1], [], []>} : vector<8x32xbf16>, vector<32x256xbf16>, vector<8x256xf32> -> vector<8x256xf32>
    %7 = arith.addf %3, %6 : vector<8x256xf32>
    %c0_6 = arith.constant 0 : index
    %c0_7 = arith.constant 0 : index
    %8 = vector.load %arg7[%c0_6, %c0_7] : memref<8x256xf32, #tpu.memory_space<vmem>>, vector<8x256xf32>
    tpu.vector_store %arg7[%c0_6, %c0_7], %7 {strides = array<i32>} : memref<8x256xf32, #tpu.memory_space<vmem>>, vector<8x256xf32>,
    %c0_i32_8 = arith.constant 0 : i32
    %9 = arith.cmpi eq, %arg2, %c0_i32_8 : i32
    %10 = arith.extui %9 : i1 to i32
    %c0_i32_9 = arith.constant 0 : i32
    %11 = arith.cmpi ne, %10, %c0_i32_9 : i32
    scf.if %11 {
      %c0_10 = arith.constant 0 : index
      %c0_11 = arith.constant 0 : index
      %12 = vector.load %arg7[%c0_10, %c0_11] : memref<8x256xf32, #tpu.memory_space<vmem>>, vector<8x256xf32>
      %c0_12 = arith.constant 0 : index
      %c0_13 = arith.constant 0 : index
      %13 = vector.load %arg5[%c0_12, %c0_13] : memref<1x256xf32, #tpu.memory_space<vmem>>, vector<1x256xf32>
      %14 = vector.broadcast %13 : vector<1x256xf32> to vector<8x256xf32>
      %15 = arith.addf %12, %14 : vector<8x256xf32>
      %c0_14 = arith.constant 0 : index
      %c0_15 = arith.constant 0 : index
      %16 = vector.load %arg6[%c0_14, %c0_15] : memref<8x256xf32, #tpu.memory_space<vmem>>, vector<8x256xf32>
      tpu.vector_store %arg6[%c0_14, %c0_15], %15 {strides = array<i32>} : memref<8x256xf32, #tpu.memory_space<vmem>>, vector<8x256xf32>,
    } else {
    }
    return
  }
  func.func @transform_0(%arg0: i32, %arg1: i32, %arg2: i32) -> (i32, i32) {
    %c0_i32 = arith.constant 0 : i32
    return %arg0, %arg2 : i32, i32
  }
  func.func @transform_1(%arg0: i32, %arg1: i32, %arg2: i32) -> (i32, i32) {
    %c0_i32 = arith.constant 0 : i32
    return %arg2, %arg1 : i32, i32
  }
  func.func @transform_2(%arg0: i32, %arg1: i32, %arg2: i32) -> (i32, i32) {
    %c0_i32 = arith.constant 0 : i32
    %c0_i32_0 = arith.constant 0 : i32
    return %c0_i32, %arg1 : i32, i32
  }
  func.func @transform_3(%arg0: i32, %arg1: i32, %arg2: i32) -> (i32, i32) {
    %c0_i32 = arith.constant 0 : i32
    return %arg0, %arg1 : i32, i32
  }
}

</mosaic_0001>

<bundles_post_ra>
// kernel: tpu_custom_call.1
= control target key start
LH: loop header
LB: loop body
LE: loop exit
PB: predicated region body
PF: predicated region fallthrough
CT: control target
= control target key end

     0   :  { %s1036_s0 = inlined_call_operand.hbm [shape: bf16[8,32], index: 0, kind: input, shape index: {}]   ;;  %s1037_s1 = inlined_call_operand.hbm [shape: bf16[32,512], index: 1, kind: input, shape index: {}]   ;;  %s1038_s2 = inlined_call_operand.hbm [shape: f32[1,512], index: 2, kind: input, shape index: {}]   ;;  %s1039_s3 = inlined_call_operand.hbm [shape: f32[8,512], index: 3, kind: output, shape index: {}]  }
   0x1   :  { %1043 = sst [smem:[#allocation13_spill]] %s1037_s1 }
   0x2   :  { %8 = vsyncpa [#allocation4], 0 }
   0x3   :  { %9 = vsyncpa [#allocation7], 0 }
   0x4   :  { %11 = vsyncpa [#allocation7 + $0x1], 0 }
   0x5   :  { %12 = vsyncpa [#allocation5], 0 }
   0x6   :  { %14 = vsyncpa [#allocation5 + $0x1], 0  ;;  %s833_s12 = smov 0   ;;  %s835_s13 = smov 0  }
   0x7   :  { %s837_s14 = smov 0   ;;  %s839_s15 = smov 0  }
   0x8   :  { %s841_s16 = smov 0   ;;  %s843_s17 = smov 0  }
   0x9 LB: > { %s35_s18 = sadd.s32 1, %s799_s16  ;;  %s76_s19 = sadd.s32 1, %s791_s14  ;;  %s803_s17 = sphi %s843_s17, %s20_s17   ;;  %s799_s16 = sphi %s841_s16, %s1061_s16   ;;  %s795_s15 = sphi %s839_s15, %s1060_s15   ;;  %s791_s14 = sphi %s837_s14, %s1059_s14   ;;  %s787_s13 = sphi %s835_s13, %s1058_s13   ;;  %s783_s12 = sphi %s833_s12, %s1057_s12  }
   0xa   : > { %p37_p0 = scmp.ge.s32.totalorder %s35_s18, 2  ;;  %p83_p1 = scmp.ne.s32.totalorder %s791_s14, %s787_s13 }
   0xb   : > { %p84_p2 = scmp.eq.s32.totalorder %s803_s17, 0  ;;  %p575_p5 = scmp.lt.s32.totalorder %s803_s17, 2 }
   0xc   : > { %s1063_s18 = smov (%p37_p0, %s35_s18), 0  ;;  %s181_s21 = sand.u32 1, %s803_s17  }
   0xd   : > { %p85_p4 = por %p84_p2, %p83_p1  ;;  %s72_s20 = ssub.s32 %s799_s16, %s1063_s18 }
   0xe   : > { %p74_p6 = scmp.eq.s32.totalorder %s72_s20, 0  ;;  %s183_s22 = sand.u32 1, %s791_s14  }
   0xf   : > { %s546_s23 = sshll.u32 %s799_s16, 7  ;;  %s525_s25 = sshll.u32 %s183_s22, 5 }
  0x10   : > { %s881_s24 = scalar_select %p74_p6, %s791_s14, %s76_s19  }
  0x11   : > { %s1044_s1 = sld [smem:[#allocation13_spill]]  ;;  %p888_p7 = pnand %p575_p5, %p85_p4 }
  0x12   : > { %s185_s30 = scalar_lea.vmem [#allocation6], %s525_s25  ;;  %s892_s5 = scalar_lea.sflag [#allocation7], %s181_s21 }
  0x13   : > { %s195_s4 = sshll.u32 %s185_s30, 4  ;;  %p639_p8 = pneg %p888_p7  ;;  %s196_s4 = int_to_ptr.vmem [resolvable:$true] %s195_s4 }
  0x14   : > { %s650_s6 = scalar_lea.vmem %s196_s4, 512  ;;  %s805_s7 = smov [#allocation6]  }
  0x15   : > { %p651_p9 = scmp.ne.s32.totalorder %s196_s4, %s650_s6  ;;  %s655_s8 = sshll.u32 %s805_s7, 4  ;;  %s656_s8 = int_to_ptr.vmem [resolvable:$false] %s655_s8 }
  0x16   : > { %s657_s9 = scalar_lea.vmem %s656_s8, 1024  ;;  %p658_p12 = scmp.lt.s32.totalorder %s196_s4, %s656_s8 }
  0x17   : > { %s194_s28 = scalar_lea.hbm %s1044_s1, %s546_s23  ;;  %p653_p10 = pnand %p651_p9, %p639_p8 }
  0x18   : > { %p659_p13 = scmp.lt.s32.totalorder %s657_s9, %s650_s6 }
  0x19   : > { %p654_p11 = pneg %p653_p10 }
  0x1a   : > { %p660_p0 = por %p659_p13, %p658_p12 }
  0x1c   : > { %p661_p2 = pnand %p660_p0, %p654_p11 }
  0x1e   : > { %664 = shalt.err (!%p661_p2)
}
  0x1f   : > { %s806_s10 = smov 256   ;;  %s807_s11 = smov 128  }
  0x20   : > { %s808_s19 = smov 8   ;;  %s903_s20 = sadd.s32 4294967295, %s803_s17  }
  0x21   : > { %566 = dma.hbm_to_vmem [thread:$0]  (!%p888_p7), %s194_s28, 512, %s196_s4, %s892_s5, %s806_s10, %s807_s11, %s808_s19  }
  0x22   : > { %s521_s21 = sadd.s32 4294967294, %s803_s17   ;;  %p89_p4 = scmp.ne.s32.totalorder %s787_s13, %s783_s12 }
  0x23   : > { %p1041_p5 = scmp.eq.s32.totalorder %s903_s20, 0  ;;  %p141_p6 = scmp.eq.s32.totalorder %s903_s20, 1 }
  0x24   : > { %p147_p9 = scmp.eq.s32.totalorder %s521_s21, 1  ;;  %p522_p11 = scmp.ge.s32.totalorder %s803_s17, 1 }
  0x25   : > { %p912_p10 = por %p1041_p5, %p89_p4  ;;  %p920_p12 = por %p141_p6, %p83_p1 }
  0x26   : > { %p924_p13 = por %p147_p9, %p89_p4  ;;  %p154_p0 = scmp.lt.s32.totalorder %s803_s17, 3 }
  0x27   : > { %s1046_s23 = scalar_select %p912_p10, 1, 0 }
  0x28   : > { %s1047_s25 = scalar_select %p920_p12, 1, 0 }
  0x29   : > { %s1048_s26 = scalar_select %p924_p13, 1, 0 }
  0x2a   : > { %s528_s27 = sshll.u32 %s183_s22, 1  ;;  %p931_p2 = pnand %p522_p11, %p154_p0 }
  0x2b   : > { %s809_s30 = smov [#allocation3]   ;;  %s547_s6 = sshll.u32 %s799_s16, 5 }
  0x2c   : > { %s170_s4 = sshll.u32 %s809_s30, 4  ;;  %p559_p1 = pneg %p931_p2  ;;  %s935_s4 = int_to_ptr.vmem [resolvable:$true] %s170_s4 }
  0x2d   : > { %s215_s9 = scalar_lea.hbm %s1038_s2, %s547_s6  ;;  %s209_s10 = scalar_lea.vmem [#allocation8], %s528_s27 }
  0x2e   : > { %s217_s11 = sshll.u32 %s209_s10, 4  ;;  %p945_p4 = pnand %p559_p1, %p1041_p5  ;;  %s218_s11 = int_to_ptr.vmem [resolvable:$true] %s217_s11 }
  0x2f   : > { %s678_s19 = scalar_lea.vmem %s218_s11, 32  ;;  %s810_s21 = smov [#allocation8]  }
  0x30   : > { %p679_p6 = scmp.ne.s32.totalorder %s218_s11, %s678_s19  ;;  %s683_s30 = sshll.u32 %s810_s21, 4  ;;  %s684_s30 = int_to_ptr.vmem [resolvable:$false] %s683_s30 }
  0x31   : > { %s685_s1 = scalar_lea.vmem %s684_s30, 64  ;;  %p686_p0 = scmp.lt.s32.totalorder %s218_s11, %s684_s30 }
  0x32   : > { %p681_p9 = pnand %p679_p6, %p639_p8  ;;  %p687_p3 = scmp.lt.s32.totalorder %s685_s1, %s678_s19 }
  0x34   : > { %p682_p11 = pneg %p681_p9  ;;  %p688_p13 = por %p687_p3, %p686_p0 }
  0x36   : > { %p689_p12 = pnand %p688_p13, %p682_p11 }
  0x38   : > { %692 = shalt.err (!%p689_p12)
}
  0x39   : > { %569 = dma.hbm_to_vmem [thread:$0]  (!%p888_p7), %s215_s9, 32, %s218_s11, %s892_s5  }
  0x3a   : > { %p695_p8 = pneg %p945_p4  ;;  %s704_s27 = scalar_lea.vmem %s935_s4, 64 }
  0x3b   : > { %p705_p1 = scmp.ne.s32.totalorder %s935_s4, %s704_s27  ;;  %p712_p5 = scmp.lt.s32.totalorder %s935_s4, %s935_s4 }
  0x3c   : > { %p713_p10 = scmp.lt.s32.totalorder %s704_s27, %s704_s27 }
  0x3d   : > { %p707_p6 = pnand %p705_p1, %p695_p8 }
  0x3e   : > { %p714_p3 = por %p713_p10, %p712_p5 }
  0x3f   : > { %p708_p9 = pneg %p707_p6 }
  0x41   : > { %p715_p13 = pnand %p714_p3, %p708_p9 }
  0x43   : > { %718 = shalt.err (!%p715_p13)
}
  0x44   : > { %562 = dma.hbm_to_vmem [thread:$0]  (!%p945_p4), %s1036_s0, 64, %s935_s4, [#allocation4]  }
  0x45   : > { %226 = sbr.rel (%p931_p2) target bundleno = 300 (0x12c), region = 32  ;;  %p1051_p7 = scmp.eq.s32.totalorder (!%p931_p2), %s903_s20, 0 }
  0x4a   : > { %770 = dma.done.wait (%p1051_p7), [#allocation4], 64   ;;  %p1052_p12 = pmov %p1051_p7 }
  0x4b   : > { %s232_s5 = sand.u32 1, %s903_s20   ;;  %s975_s6 = sand.u32 1, %s787_s13  }
  0x4c   : > { %772 = vsyncadd (%p1052_p12), [#allocation4], 4294967232  ;;  %s533_s7 = sshll.u32 %s975_s6, 5  ;;  %s233_s8 = scalar_lea.sflag [#allocation7], %s232_s5 }
  0x4d   : > { %s236_s9 = scalar_lea.vmem [#allocation6], %s533_s7  ;;  %p1053_p5 = scmp.ne.s32.totalorder %s1046_s23, 0 }
  0x4f   : > { %774 = dma.done.wait (%p1053_p5), %s233_s8, 544  }
  0x50   : > { %776 = vsyncadd (%p1053_p5), %s233_s8, 4294966752  ;;  %v811_v0 = vmov 0   ;;  %v631_v1 = vld [vmem:[%s236_s9 + $0x14] ss:$8 sps:$4 sm:$0xff]   ;;  %v633_v2 = vld [vmem:[%s236_s9 + $0x10] ss:$8 sps:$4 sm:$0xff]   ;;  %v367_v6 = vlaneseq }
  0x51   : > { %347 = vmatprep.mubr.bf16.mxu0 %v811_v0  ;;  %327 = vmatprep.subr.bf16.mxu0 %v631_v1  ;;  %v634_v3 = vld [vmem:[%s236_s9 + $0x4] ss:$8 sps:$4 sm:$0xff]   ;;  %v636_v4 = vld [vmem:[%s236_s9] ss:$8 sps:$4 sm:$0xff]   ;;  %v286_v5 = vld [vmem:[#allocation3] sm:$0xf] }
  0x52   : > { %328 = vmatpush1.bf16.msra.mxu0 %v633_v2  ;;  %vm311_vm0 = vcmask 261120   ;;  %s534_s20 = sshll.u32 %s975_s6, 1  ;;  %v368_v7 = vshrl.u32 %v367_v6, 7  ;;  %s535_s23 = sshll.u32 %s975_s6, 4 }
  0x53   : > { %329 = vmatprep.subr.bf16.mxu0 %v634_v3  ;;  %s245_s28 = scalar_lea.vmem [#allocation8], %s534_s20  ;;  %s548_s4 = sshll.u32 %s795_s15, 8 }
  0x54   : > { %v369_v8 = vsub.s32 0, %v368_v7  ;;  %v365_v9 = vld [vmem:[%s245_s28] sm:$0x3]  ;;  %v373_v10 = vsub.s32 1, %v368_v7  ;;  %s272_s10 = scalar_lea.vmem [#allocation9], %s535_s23  ;;  %s988_s21 = scalar_lea.hbm %s1039_s3, %s548_s4 }
  0x55   : > { %s398_s11 = sshll.u32 %s272_s10, 4  ;;  %s382_s15 = scalar_lea.sflag [#allocation5], %s975_s6  ;;  %s990_s11 = int_to_ptr.vmem [resolvable:$true] %s398_s11 }
  0x56   : > { %330 = vmatpush1.bf16.msra.mxu0 %v636_v4  ;;  %v370_v11 = vrot.slane %v365_v9, %v369_v8  ;;  %v374_v12 = vrot.slane %v365_v9, %v373_v10  ;;  %s719_s30 = scalar_lea.vmem %s990_s11, 256  ;;  %p1054_p2 = scmp.ne.s32.totalorder %s1047_s25, 0 }
  0x57   : > { %p720_p10 = scmp.ne.s32.totalorder %s990_s11, %s719_s30  ;;  %s812_s27 = smov [#allocation9]  }
  0x58   : > { %s723_s1 = sshll.u32 %s812_s27, 4  ;;  %s724_s1 = int_to_ptr.vmem [resolvable:$false] %s723_s1 }
  0x59   : > { %540 = vmatmul.mubr.msk.bf16.vlgmr.msra.gmra.mxu0 %vm311_vm0, %v286_v5  ;;  %p721_p4 = pnand %p720_p10, %p1054_p2  ;;  %s725_s29 = scalar_lea.vmem %s724_s1, 512 }
  0x5a   : > { %p726_p0 = scmp.lt.s32.totalorder %s990_s11, %s724_s1  ;;  %p727_p8 = scmp.lt.s32.totalorder %s725_s29, %s719_s30 }
  0x5b   : > { %p722_p11 = pneg %p721_p4 }
  0x5c   : > { %p728_p1 = por %p727_p8, %p726_p0 }
  0x5e   : > { %p729_p6 = pnand %p728_p1, %p722_p11 }
 0x119   : > { %v349_v13 = vpop.f32.mrf.mxu0 }
 0x11a   : > { %v377_v14 = vadd.f32 %v370_v11, %v349_v13 }
 0x11b   : > { %v351_v15 = vpop.f32.mrf.mxu0 }
 0x11c   : > { %379 = vst [vmem:[%s272_s10] sm:$0xff] %v377_v14  ;;  %v378_v16 = vadd.f32 %v374_v12, %v351_v15 }
 0x11d   : > { %v353_v17 = vpop.f32.mrf.mxu0 }
 0x11e   : > { %380 = vst [vmem:[%s272_s10 + $0x8] sm:$0xff] %v378_v16 }
 0x11f   : > { %v354_v18 = vpop.f32.mrf.mxu0 }
 0x120   : > { %732 = shalt.err (!%p729_p6)
}
 0x121   : > { %s733_s5 = scalar_lea.hbm %s988_s21, 256  ;;  %s737_s8 = scalar_lea.hbm %s1039_s3, 512 }
 0x122   : > { %p734_p9 = scmp.ne.s32.totalorder %s988_s21, %s733_s5  ;;  %p738_p7 = scmp.lt.s32.totalorder %s988_s21, %s1039_s3 }
 0x123   : > { %p739_p12 = scmp.lt.s32.totalorder %s737_s8, %s733_s5 }
 0x124   : > { %p735_p3 = pnand %p734_p9, %p1054_p2 }
 0x125   : > { %p740_p5 = por %p739_p12, %p738_p7 }
 0x126   : > { %p736_p13 = pneg %p735_p3 }
 0x128   : > { %p741_p10 = pnand %p740_p5, %p736_p13 }
 0x12a   : > { %744 = shalt.err (!%p741_p10)
}
 0x12b   : > { %557 = dma.vmem_to_hbm [thread:$0]  (%p1054_p2), %s990_s11, 256, %s988_s21, %s382_s15  }
 0x12c PF: > { %s410_s23 = sand.u32 1, %s783_s12   ;;  %p1055_p4 = scmp.ne.s32.totalorder %s1048_s26, 0 }
 0x12d   : > { %p1056_p11 = scmp.ge.s32.totalorder %s803_s17, 2  ;;  %s411_s28 = scalar_lea.sflag [#allocation5], %s410_s23 }
 0x12f   : > { %p571_p0 = pnand %p1056_p11, %p1055_p4 }
 0x131   : > { %p572_p8 = pneg %p571_p0 }
 0x133   : > { %778 = dma.done.wait (%p572_p8), %s411_s28, 256  }
 0x134   : > { %780 = vsyncadd (%p572_p8), %s411_s28, 4294967040  ;;  %s20_s17 = sadd.s32 1, %s803_s17   ;;  %s1057_s12 = smov %s787_s13 }
 0x135   : > { %p17_p1 = scmp.ge.s32.totalorder %s20_s17, 4   ;;  %s1058_s13 = smov %s791_s14 }
 0x136   : > { %s1059_s14 = smov %s881_s24  ;;  %s1060_s15 = smov %s799_s16 }
 0x137   : > { %s1061_s16 = smov %s1063_s18  ;;  %19 = sbr.rel (!%p17_p1) target bundleno = 9 (0x9), region = 102 }
 0x13c   :  { %416 = vsyncpa [#allocation4], 1 }
 0x13d   :  { %418 = vsyncpa [#allocation4 + $0x1], 1 }
 0x13e   :  { %419 = vsyncpa [#allocation7], 1 }
 0x13f   :  { %421 = vsyncpa [#allocation7 + $0x1], 1 }
 0x140   :  { %422 = vsyncpa [#allocation5], 1 }
 0x141   :  { %424 = vsyncpa [#allocation5 + $0x1], 1 }

</bundles_post_ra>
